<compile_context>
chip_gen: v7x
topology: tpu7x:2x2x1
jax: 0.10.0
libtpu: 0.0.40
codegen_flags: <defaults>
</compile_context>

<pallas_src>
import functools

import jax
import jax.numpy as jnp
from jax.experimental import pallas as pl
from jax.experimental.pallas import tpu as pltpu


# ---------------------------------------------------------------------------
# Kernel A (row-tiled): GCN layer-1 propagation fused with the layer-2
# feature transform.
#   H1_tile  = relu(A_tile(bf16) @ XW1(bf16) + b1)     -- f32 accumulate
#   HW2_tile = H1_tile(bf16) @ W2(bf16)                -- f32 accumulate, bf16 out
# ---------------------------------------------------------------------------
def prop1_kernel(a_ref, xw_ref, b1_ref, w2_ref, o_ref):
    h = jnp.dot(a_ref[...], xw_ref[...], preferred_element_type=jnp.float32)
    h = jnp.maximum(h + b1_ref[...], 0.0)
    # TODO(synk): training-mode dropout (p=0.5) would use pltpu.prng_seed +
    # pltpu.prng_random_bits; inference (eval) semantics are identity.
    hw2 = jnp.dot(h.astype(jnp.bfloat16), w2_ref[...],
                  preferred_element_type=jnp.float32)
    o_ref[...] = hw2.astype(o_ref.dtype)


# ---------------------------------------------------------------------------
# Kernel B (row-tiled): GCN layer-2 propagation + Linear + log_softmax.
# The feature axis is padded to a multiple of 128 lanes; padded bias columns
# hold -1e30, so padded logits fall out of the max/sum reductions without any
# per-tile masking.  Output stays f32; the wrapper slices [:N, :F].
# ---------------------------------------------------------------------------
def prop2_out_kernel(a_ref, hw_ref, b2_ref, w3_ref, b3_ref, o_ref):
    h2 = jnp.dot(a_ref[...], hw_ref[...], preferred_element_type=jnp.float32)
    h2 = jnp.maximum(h2 + b2_ref[...], 0.0)

    logits = jnp.dot(h2.astype(jnp.bfloat16), w3_ref[...],
                     preferred_element_type=jnp.float32) + b3_ref[...]

    m = jnp.max(logits, axis=1, keepdims=True)
    z = logits - m
    lse = jnp.log(jnp.sum(jnp.exp(z), axis=1, keepdims=True))
    o_ref[...] = z - lse


# ---------------------------------------------------------------------------
# Row-tile selection: largest tile with >= 8 grid steps (v7x megacore balance)
# whose double-buffered bf16 A tile stays well under the v7x VMEM budget.
# ---------------------------------------------------------------------------
def _pick_tm(n):
    for tm in (512, 256, 128, 64, 32):
        if pl.cdiv(n, tm) >= 8 and 2 * tm * n * 2 <= 24 * 1024 * 1024:
            return tm
    return 32  # tiny graphs: more (smaller) steps beats one giant tile
    # TODO(synk): very large N_pad would need a K grid axis ("arbitrary") with
    # an f32 accumulator scratch instead of a full-width (tm, N_pad) A tile.


# ---------------------------------------------------------------------------
# A_hat staging (bf16 + row/col padding).  Done ONCE, outside the jitted
# forward, and reused across forward calls.
# ---------------------------------------------------------------------------
def stage_adjacency(a_hat, tm):
    n = a_hat.shape[0]
    n_pad = pl.cdiv(n, tm) * tm
    return jnp.pad(a_hat.astype(jnp.bfloat16), ((0, n_pad - n), (0, n_pad - n)))


# ---------------------------------------------------------------------------
# Wrapper: XLA-side staging + two row-tiled pallas_calls.
# ---------------------------------------------------------------------------
def gcn_net_forward(a_p, x, w1, b1, w2, b2, w3t, b3, *, tm):
    N, F = x.shape
    N_pad = a_p.shape[0]
    n_tiles = N_pad // tm
    H1 = w1.shape[1]          # 32
    H2 = w2.shape[1]          # 16
    F_pad = pl.cdiv(F, 128) * 128          # lane-dense output feature axis

    # --- XLA-side staging (layout/dtype plumbing + trivial feature xform) ---
    x_p = jnp.pad(x.astype(jnp.float32), ((0, N_pad - N), (0, 0)))
    xw1 = (x_p @ w1).astype(jnp.bfloat16)            # hoisted X @ W1, bf16 for MXU
    w2_b = w2.astype(jnp.bfloat16)
    w3t_b = jnp.pad(w3t, ((0, 0), (0, F_pad - F))).astype(jnp.bfloat16)
    # Padded bias columns are -1e30 so padded logits drop out of the softmax.
    b3_p = jnp.pad(b3, ((0, 0), (0, F_pad - F)), constant_values=-1e30)

    cparams = pltpu.CompilerParams(
        dimension_semantics=("parallel",),
        vmem_limit_bytes=48 * 1024 * 1024,
    )

    # --- Kernel A: HW2 = relu(A @ XW1 + b1) @ W2, row-tiled over A ----------
    hw2 = pl.pallas_call(
        prop1_kernel,
        out_shape=jax.ShapeDtypeStruct((N_pad, H2), jnp.bfloat16),
        grid=(n_tiles,),
        in_specs=[
            pl.BlockSpec((tm, N_pad), lambda i: (i, 0)),
            pl.BlockSpec((N_pad, H1), lambda i: (0, 0)),
            pl.BlockSpec((1, H1), lambda i: (0, 0)),
            pl.BlockSpec((H1, H2), lambda i: (0, 0)),
        ],
        out_specs=pl.BlockSpec((tm, H2), lambda i: (i, 0)),
        compiler_params=cparams,
    )(a_p, xw1, b1, w2_b)

    # --- Kernel B: out = log_softmax(relu(A @ HW2 + b2) @ W3^T + b3) --------
    out_p = pl.pallas_call(
        prop2_out_kernel,
        out_shape=jax.ShapeDtypeStruct((N_pad, F_pad), jnp.float32),
        grid=(n_tiles,),
        in_specs=[
            pl.BlockSpec((tm, N_pad), lambda i: (i, 0)),
            pl.BlockSpec((N_pad, H2), lambda i: (0, 0)),
            pl.BlockSpec((1, H2), lambda i: (0, 0)),
            pl.BlockSpec((H2, F_pad), lambda i: (0, 0)),
            pl.BlockSpec((1, F_pad), lambda i: (0, 0)),
        ],
        out_specs=pl.BlockSpec((tm, F_pad), lambda i: (i, 0)),
        compiler_params=cparams,
    )(a_p, hw2, b2, w3t_b, b3_p)

    return out_p[:N, :F]


# ---------------------------------------------------------------------------
# Plain-JAX glue: D^-1/2 (A + I) D^-1/2 from edge_index (PyG gcn_norm).
# ---------------------------------------------------------------------------
def build_normalized_adjacency(edge_index, num_nodes):
    src, dst = edge_index[0], edge_index[1]
    loop = jnp.arange(num_nodes, dtype=edge_index.dtype)
    src = jnp.concatenate([src, loop])
    dst = jnp.concatenate([dst, loop])
    deg = jnp.zeros((num_nodes,), jnp.float32).at[dst].add(1.0)
    dinv = jnp.where(deg > 0, 1.0 / jnp.sqrt(deg), 0.0)
    vals = dinv[dst] * dinv[src]
    a_hat = jnp.zeros((num_nodes, num_nodes), jnp.float32).at[dst, src].add(vals)
    return a_hat


# ---------------------------------------------------------------------------
# Deterministic parameter initialization (shapes from Net.__init__).
# ---------------------------------------------------------------------------
def init_params(key, num_features, h1=32, h2=16):
    k1, k2, k3 = jax.random.split(key, 3)
    w1 = jax.random.normal(k1, (num_features, h1), jnp.float32) * 0.1   # GCNConv1
    b1 = jnp.zeros((1, h1), jnp.float32)
    w2 = jax.random.normal(k2, (h1, h2), jnp.float32) * 0.1             # GCNConv2
    b2 = jnp.zeros((1, h2), jnp.float32)
    # torch Linear(16, F): weight is (F, 16); we pass its transpose (16, F).
    w3 = jax.random.normal(k3, (num_features, h2), jnp.float32) * 0.1
    b3 = jnp.zeros((1, num_features), jnp.float32)
    return w1, b1, w2, b2, w3.T, b3


# Pure-JAX reference of the forward pass (f32 end-to-end) for validation.
def gcn_reference(a_hat, x, w1, b1, w2, b2, w3t, b3):
    h = jnp.maximum(a_hat @ (x @ w1) + b1, 0.0)
    h = jnp.maximum(a_hat @ (h @ w2) + b2, 0.0)
    logits = h @ w3t + b3
    return jax.nn.log_softmax(logits, axis=1)


if __name__ == "__main__":
    key = jax.random.PRNGKey(0)
    N = 200             # number of graph nodes (exercises row padding)
    F = 16              # dataset.num_features (small synthetic)
    E = 600             # number of directed edges

    k_x, k_e, k_p = jax.random.split(key, 3)

    # Node features (NormalizeFeatures ~ row-normalized nonneg features).
    x = jax.random.uniform(k_x, (N, F), jnp.float32)
    x = x / jnp.maximum(jnp.sum(x, axis=1, keepdims=True), 1e-12)

    # Random edge_index (2, E).
    edge_index = jax.random.randint(k_e, (2, E), 0, N, dtype=jnp.int32)

    a_hat = build_normalized_adjacency(edge_index, N)
    w1, b1, w2, b2, w3t, b3 = init_params(k_p, F)

    # Stage A_hat once (bf16 + padded), reuse across forward calls.
    tm = _pick_tm(N)
    a_p = jax.block_until_ready(stage_adjacency(a_hat, tm))

    fwd = jax.jit(functools.partial(gcn_net_forward, tm=tm))
    out = jax.block_until_ready(fwd(a_p, x, w1, b1, w2, b2, w3t, b3))

    ref = gcn_reference(a_hat, x, w1, b1, w2, b2, w3t, b3)

    assert out.shape == (N, F)
    assert bool(jnp.all(jnp.isfinite(out)))
    # log_softmax rows must sum (in prob space) to ~1.
    assert bool(jnp.allclose(jnp.sum(jnp.exp(out), axis=1), 1.0, atol=1e-4))
    # bf16-operand kernels vs f32 reference (loose tolerance for bf16).
    assert float(jnp.max(jnp.abs(out - ref))) < 5e-2

    print("KERNEL_OK")
</pallas_src>

<mosaic_0001>
module attributes {stable_mosaic.version = 11 : i64} {
  func.func @prop1_kernel(%arg0: i32, %arg1: memref<32x224xbf16, #tpu.memory_space<vmem>>, %arg2: memref<224x32xbf16, #tpu.memory_space<vmem>>, %arg3: memref<1x32xf32, #tpu.memory_space<vmem>>, %arg4: memref<32x16xbf16, #tpu.memory_space<vmem>>, %arg5: memref<32x16xbf16, #tpu.memory_space<vmem>>) attributes {dimension_semantics = [#tpu.dimension_semantics<parallel>], iteration_bounds = array<i64: 7>, scalar_prefetch = 0 : i64, scratch_operands = 0 : i64, tpu.core_type = #tpu.core_type<tc>, window_params = [{transform_indices = @transform_0, window_bounds = array<i64: 32, 224>}, {pipeline_mode = #tpu.pipeline_mode<synchronous>, transform_indices = @transform_1, window_bounds = array<i64: 224, 32>}, {pipeline_mode = #tpu.pipeline_mode<synchronous>, transform_indices = @transform_2, window_bounds = array<i64: 1, 32>}, {pipeline_mode = #tpu.pipeline_mode<synchronous>, transform_indices = @transform_3, window_bounds = array<i64: 32, 16>}, {transform_indices = @transform_4, window_bounds = array<i64: 32, 16>}]} {
    %c0 = arith.constant 0 : index
    %c0_0 = arith.constant 0 : index
    %0 = vector.load %arg1[%c0, %c0_0] : memref<32x224xbf16, #tpu.memory_space<vmem>>, vector<32x224xbf16>
    %c0_1 = arith.constant 0 : index
    %c0_2 = arith.constant 0 : index
    %1 = vector.load %arg2[%c0_1, %c0_2] : memref<224x32xbf16, #tpu.memory_space<vmem>>, vector<224x32xbf16>
    %cst = arith.constant dense<0.000000e+00> : vector<32x32xf32>
    %2 = tpu.matmul %0, %1, %cst {dimension_numbers = #tpu.dot_dimension_numbers<[1], [0], [0], [1], [0, 0, 1, 1], [], []>} : vector<32x224xbf16>, vector<224x32xbf16>, vector<32x32xf32> -> vector<32x32xf32>
    %c0_3 = arith.constant 0 : index
    %c0_4 = arith.constant 0 : index
    %3 = vector.load %arg3[%c0_3, %c0_4] : memref<1x32xf32, #tpu.memory_space<vmem>>, vector<1x32xf32>
    %4 = vector.broadcast %3 : vector<1x32xf32> to vector<32x32xf32>
    %5 = arith.addf %2, %4 : vector<32x32xf32>
    %cst_5 = arith.constant 0.000000e+00 : f32
    %6 = vector.broadcast %cst_5 : f32 to vector<32x32xf32>
    %7 = arith.maximumf %5, %6 : vector<32x32xf32>
    %8 = arith.truncf %7 : vector<32x32xf32> to vector<32x32xbf16>
    %c0_6 = arith.constant 0 : index
    %c0_7 = arith.constant 0 : index
    %9 = vector.load %arg4[%c0_6, %c0_7] : memref<32x16xbf16, #tpu.memory_space<vmem>>, vector<32x16xbf16>
    %cst_8 = arith.constant dense<0.000000e+00> : vector<32x16xf32>
    %10 = tpu.matmul %8, %9, %cst_8 {dimension_numbers = #tpu.dot_dimension_numbers<[1], [0], [0], [1], [0, 0, 1, 1], [], []>} : vector<32x32xbf16>, vector<32x16xbf16>, vector<32x16xf32> -> vector<32x16xf32>
    %11 = arith.truncf %10 : vector<32x16xf32> to vector<32x16xbf16>
    %c0_9 = arith.constant 0 : index
    %c0_10 = arith.constant 0 : index
    %12 = vector.load %arg5[%c0_9, %c0_10] : memref<32x16xbf16, #tpu.memory_space<vmem>>, vector<32x16xbf16>
    tpu.vector_store %arg5[%c0_9, %c0_10], %11 {strides = array<i32>} : memref<32x16xbf16, #tpu.memory_space<vmem>>, vector<32x16xbf16>,
    return
  }
  func.func @transform_0(%arg0: i32) -> (i32, i32) {
    %c0_i32 = arith.constant 0 : i32
    %c0_i32_0 = arith.constant 0 : i32
    return %arg0, %c0_i32 : i32, i32
  }
  func.func @transform_1(%arg0: i32) -> (i32, i32) {
    %c0_i32 = arith.constant 0 : i32
    %c0_i32_0 = arith.constant 0 : i32
    %c0_i32_1 = arith.constant 0 : i32
    return %c0_i32, %c0_i32_0 : i32, i32
  }
  func.func @transform_2(%arg0: i32) -> (i32, i32) {
    %c0_i32 = arith.constant 0 : i32
    %c0_i32_0 = arith.constant 0 : i32
    %c0_i32_1 = arith.constant 0 : i32
    return %c0_i32, %c0_i32_0 : i32, i32
  }
  func.func @transform_3(%arg0: i32) -> (i32, i32) {
    %c0_i32 = arith.constant 0 : i32
    %c0_i32_0 = arith.constant 0 : i32
    %c0_i32_1 = arith.constant 0 : i32
    return %c0_i32, %c0_i32_0 : i32, i32
  }
  func.func @transform_4(%arg0: i32) -> (i32, i32) {
    %c0_i32 = arith.constant 0 : i32
    %c0_i32_0 = arith.constant 0 : i32
    return %arg0, %c0_i32 : i32, i32
  }
}

module attributes {stable_mosaic.version = 11 : i64} {
  func.func @prop2_out_kernel(%arg0: i32, %arg1: memref<32x224xbf16, #tpu.memory_space<vmem>>, %arg2: memref<224x16xbf16, #tpu.memory_space<vmem>>, %arg3: memref<1x16xf32, #tpu.memory_space<vmem>>, %arg4: memref<16x128xbf16, #tpu.memory_space<vmem>>, %arg5: memref<1x128xf32, #tpu.memory_space<vmem>>, %arg6: memref<32x128xf32, #tpu.memory_space<vmem>>) attributes {dimension_semantics = [#tpu.dimension_semantics<parallel>], iteration_bounds = array<i64: 7>, scalar_prefetch = 0 : i64, scratch_operands = 0 : i64, tpu.core_type = #tpu.core_type<tc>, window_params = [{transform_indices = @transform_0, window_bounds = array<i64: 32, 224>}, {pipeline_mode = #tpu.pipeline_mode<synchronous>, transform_indices = @transform_1, window_bounds = array<i64: 224, 16>}, {pipeline_mode = #tpu.pipeline_mode<synchronous>, transform_indices = @transform_2, window_bounds = array<i64: 1, 16>}, {pipeline_mode = #tpu.pipeline_mode<synchronous>, transform_indices = @transform_3, window_bounds = array<i64: 16, 128>}, {pipeline_mode = #tpu.pipeline_mode<synchronous>, transform_indices = @transform_4, window_bounds = array<i64: 1, 128>}, {transform_indices = @transform_5, window_bounds = array<i64: 32, 128>}]} {
    %c0 = arith.constant 0 : index
    %c0_0 = arith.constant 0 : index
    %0 = vector.load %arg1[%c0, %c0_0] : memref<32x224xbf16, #tpu.memory_space<vmem>>, vector<32x224xbf16>
    %c0_1 = arith.constant 0 : index
    %c0_2 = arith.constant 0 : index
    %1 = vector.load %arg2[%c0_1, %c0_2] : memref<224x16xbf16, #tpu.memory_space<vmem>>, vector<224x16xbf16>
    %cst = arith.constant dense<0.000000e+00> : vector<32x16xf32>
    %2 = tpu.matmul %0, %1, %cst {dimension_numbers = #tpu.dot_dimension_numbers<[1], [0], [0], [1], [0, 0, 1, 1], [], []>} : vector<32x224xbf16>, vector<224x16xbf16>, vector<32x16xf32> -> vector<32x16xf32>
    %c0_3 = arith.constant 0 : index
    %c0_4 = arith.constant 0 : index
    %3 = vector.load %arg3[%c0_3, %c0_4] : memref<1x16xf32, #tpu.memory_space<vmem>>, vector<1x16xf32>
    %4 = vector.broadcast %3 : vector<1x16xf32> to vector<32x16xf32>
    %5 = arith.addf %2, %4 : vector<32x16xf32>
    %cst_5 = arith.constant 0.000000e+00 : f32
    %6 = vector.broadcast %cst_5 : f32 to vector<32x16xf32>
    %7 = arith.maximumf %5, %6 : vector<32x16xf32>
    %8 = arith.truncf %7 : vector<32x16xf32> to vector<32x16xbf16>
    %c0_6 = arith.constant 0 : index
    %c0_7 = arith.constant 0 : index
    %9 = vector.load %arg4[%c0_6, %c0_7] : memref<16x128xbf16, #tpu.memory_space<vmem>>, vector<16x128xbf16>
    %cst_8 = arith.constant dense<0.000000e+00> : vector<32x128xf32>
    %10 = tpu.matmul %8, %9, %cst_8 {dimension_numbers = #tpu.dot_dimension_numbers<[1], [0], [0], [1], [0, 0, 1, 1], [], []>} : vector<32x16xbf16>, vector<16x128xbf16>, vector<32x128xf32> -> vector<32x128xf32>
    %c0_9 = arith.constant 0 : index
    %c0_10 = arith.constant 0 : index
    %11 = vector.load %arg5[%c0_9, %c0_10] : memref<1x128xf32, #tpu.memory_space<vmem>>, vector<1x128xf32>
    %12 = vector.broadcast %11 : vector<1x128xf32> to vector<32x128xf32>
    %13 = arith.addf %10, %12 : vector<32x128xf32>
    %cst_11 = arith.constant dense<0xFF800000> : vector<32xf32>
    %14 = vector.multi_reduction <maximumf>, %13, %cst_11 [1] : vector<32x128xf32> to vector<32xf32>
    %15 = vector.shape_cast %14 : vector<32xf32> to vector<32x1xf32>
    %16 = vector.broadcast %15 : vector<32x1xf32> to vector<32x128xf32>
    %17 = arith.subf %13, %16 : vector<32x128xf32>
    %18 = math.exp %17 : vector<32x128xf32>
    %cst_12 = arith.constant dense<0.000000e+00> : vector<32xf32>
    %19 = vector.multi_reduction <add>, %18, %cst_12 [1] : vector<32x128xf32> to vector<32xf32>
    %20 = vector.shape_cast %19 : vector<32xf32> to vector<32x1xf32>
    %21 = math.log %20 : vector<32x1xf32>
    %22 = vector.broadcast %21 : vector<32x1xf32> to vector<32x128xf32>
    %23 = arith.subf %17, %22 : vector<32x128xf32>
    %c0_13 = arith.constant 0 : index
    %c0_14 = arith.constant 0 : index
    %24 = vector.load %arg6[%c0_13, %c0_14] : memref<32x128xf32, #tpu.memory_space<vmem>>, vector<32x128xf32>
    tpu.vector_store %arg6[%c0_13, %c0_14], %23 {strides = array<i32>} : memref<32x128xf32, #tpu.memory_space<vmem>>, vector<32x128xf32>,
    return
  }
  func.func @transform_0(%arg0: i32) -> (i32, i32) {
    %c0_i32 = arith.constant 0 : i32
    %c0_i32_0 = arith.constant 0 : i32
    return %arg0, %c0_i32 : i32, i32
  }
  func.func @transform_1(%arg0: i32) -> (i32, i32) {
    %c0_i32 = arith.constant 0 : i32
    %c0_i32_0 = arith.constant 0 : i32
    %c0_i32_1 = arith.constant 0 : i32
    return %c0_i32, %c0_i32_0 : i32, i32
  }
  func.func @transform_2(%arg0: i32) -> (i32, i32) {
    %c0_i32 = arith.constant 0 : i32
    %c0_i32_0 = arith.constant 0 : i32
    %c0_i32_1 = arith.constant 0 : i32
    return %c0_i32, %c0_i32_0 : i32, i32
  }
  func.func @transform_3(%arg0: i32) -> (i32, i32) {
    %c0_i32 = arith.constant 0 : i32
    %c0_i32_0 = arith.constant 0 : i32
    %c0_i32_1 = arith.constant 0 : i32
    return %c0_i32, %c0_i32_0 : i32, i32
  }
  func.func @transform_4(%arg0: i32) -> (i32, i32) {
    %c0_i32 = arith.constant 0 : i32
    %c0_i32_0 = arith.constant 0 : i32
    %c0_i32_1 = arith.constant 0 : i32
    return %c0_i32, %c0_i32_0 : i32, i32
  }
  func.func @transform_5(%arg0: i32) -> (i32, i32) {
    %c0_i32 = arith.constant 0 : i32
    %c0_i32_0 = arith.constant 0 : i32
    return %arg0, %c0_i32 : i32, i32
  }
}

</mosaic_0001>

<bundles_post_ra>
// kernel: gcn_net_forward.2
= control target key start
LH: loop header
LB: loop body
LE: loop exit
PB: predicated region body
PF: predicated region fallthrough
CT: control target
= control target key end

     0   :  { %s680_s15 = smov 0   ;;  %s760_s0 = inlined_call_operand.vmem [shape: bf16[224,224], index: 0, kind: input, shape index: {}]   ;;  %s761_s1 = inlined_call_operand.vmem [shape: bf16[224,32], index: 1, kind: input, shape index: {}]   ;;  %s762_s2 = inlined_call_operand.vmem [shape: f32[1,32], index: 2, kind: input, shape index: {}]   ;;  %s763_s3 = inlined_call_operand.vmem [shape: bf16[32,16], index: 3, kind: input, shape index: {}]   ;;  %s764_s4 = inlined_call_operand.vmem [shape: bf16[224,16], index: 4, kind: output, shape index: {}]  }
   0x1 LB: > { %s557_s16 = sadd.s32 4294967295, %s652_s15   ;;  %p561_p0 = scmp.ge.s32.totalorder %s652_s15, 1  ;;  %s652_s15 = sphi %s680_s15, %s14_s15  }
   0x2   : > { %p164_p1 = scmp.lt.s32.totalorder %s652_s15, 8 }
   0x4   : > { %p165_p2 = pnand %p561_p0, %p164_p1 }
   0x5   : > { %v624_v0 = vld [vmem:[%s761_s1] sm:$0xff] (!%p165_p2)   ;;  %v654_v1 = vmov (!%p165_p2), 0   ;;  %s562_s19 = sshll.u32 (!%p165_p2), %s557_s16, 2  ;;  %v625_v2 = vld [vmem:[%s761_s1 + $0x8] sm:$0xff] (!%p165_p2)   ;;  %v626_v3 = vld [vmem:[%s761_s1 + $0x10] sm:$0xff] (!%p165_p2)   ;;  %vm346_vm0 = vcmask (!%p165_p2), 785408  }
   0x6   : > { %168 = sbr.rel (%p165_p2) target bundleno = 508 (0x1fc), region = 36  ;;  %353 = vmatprep.subr.bf16.mxu0 (!%p165_p2), %v654_v1  ;;  %p192_p3 = scmp.lt.s32.totalorder (!%p165_p2), %s562_s19, 27  ;;  %v627_v4 = vld [vmem:[%s761_s1 + $0x18] sm:$0xff] (!%p165_p2)   ;;  %v628_v5 = vld [vmem:[%s761_s1 + $0x20] sm:$0xff] (!%p165_p2)   ;;  %v629_v7 = vld [vmem:[%s761_s1 + $0x28] sm:$0xff] (!%p165_p2)   ;;  %vm424_vm1 = vcmask (!%p165_p2), 261120  }
   0x7   : > { %354 = vmatpush1.bf16.msra.mxu0 (!%p165_p2), %v624_v0  ;;  %v630_v8 = vld [vmem:[%s761_s1 + $0x30] sm:$0xff] (!%p165_p2)   ;;  %v631_v9 = vld [vmem:[%s761_s1 + $0x38] sm:$0xff] (!%p165_p2)   ;;  %v632_v10 = vld [vmem:[%s761_s1 + $0x40] sm:$0xff] (!%p165_p2)   ;;  %vm496_vm2 = vcmask (!%p165_p2), 125952  }
   0x8   : > { %355 = vmatprep.subr.bf16.mxu0 (!%p165_p2), %v654_v1  ;;  %v633_v11 = vld [vmem:[%s761_s1 + $0x48] sm:$0xff] (!%p165_p2)   ;;  %v634_v12 = vld [vmem:[%s761_s1 + $0x50] sm:$0xff] (!%p165_p2)   ;;  %v635_v13 = vld [vmem:[%s761_s1 + $0x58] sm:$0xff] (!%p165_p2)  }
   0x9   : > { %v636_v14 = vld [vmem:[%s761_s1 + $0x60] sm:$0xff] (!%p165_p2)   ;;  %v637_v15 = vld [vmem:[%s761_s1 + $0x68] sm:$0xff] (!%p165_p2)  }
   0xa   : > { %v644_v19 = vld [vmem:[%s763_s3] sm:$0xff] (!%p165_p2)   ;;  %v645_v20 = vld [vmem:[%s763_s3 + $0x8] sm:$0xff] (!%p165_p2)  }
   0xb   : > { %356 = vmatpush1.bf16.msra.mxu0 (!%p165_p2), %v625_v2  ;;  %607 = vmatprep.subr.bf16.mxu1 (!%p165_p2), %v644_v19  ;;  %v567_v21 = vld [vmem:[%s762_s2] ss:$0 sm:$0xff] (!%p165_p2) }
   0xc   : > { %357 = vmatprep.subr.bf16.mxu0 (!%p165_p2), %v654_v1  ;;  %608 = vmatpush3.bf16.msra.mxu1 (!%p165_p2), %v644_v19 }
   0xd   : > { %s766_s19 = smov (!%p192_p3, %s562_s19), 27  ;;  %609 = vmatprep.subr.bf16.mxu1 %v645_v20 }
   0xe   : > { %s598_s24 = sshll.u32 %s766_s19, 3 }
   0xf   : > { %358 = vmatpush1.bf16.msra.mxu0 %v626_v3  ;;  %s706_s29 = scalar_lea.vmem %s760_s0, %s598_s24 }
  0x10   : > { %359 = vmatprep.subr.bf16.mxu0 %v654_v1  ;;  %v640_v6 = vld [vmem:[%s706_s29 + $0x4] ss:$8 sps:$4 sm:$0xff]   ;;  %v638_v16 = vld [vmem:[%s706_s29] ss:$8 sps:$4 sm:$0xff]   ;;  %v641_v17 = vld [vmem:[%s706_s29 + $0x14] ss:$8 sps:$4 sm:$0xff]   ;;  %610 = vmatpush3.bf16.msra.mxu1 %v645_v20 }
  0x11   : > { %586 = vmatprep.mubr.msk.bf16.mxu0 %vm346_vm0, %v640_v6  ;;  %v643_v18 = vld [vmem:[%s706_s29 + $0x10] ss:$8 sps:$4 sm:$0xff]   ;;  %s566_s29 = sshll.u32 %s766_s19, 2 }
  0x12   : > { %s202_s9 = scalar_lea.vmem %s764_s4, %s566_s29 }
  0x13   : > { %360 = vmatpush1.bf16.msra.mxu0 %v627_v4 }
  0x14   : > { %361 = vmatprep.subr.bf16.mxu0 %v654_v1 }
  0x17   : > { %362 = vmatpush1.bf16.msra.mxu0 %v628_v5 }
  0x18   : > { %363 = vmatprep.subr.bf16.mxu0 %v654_v1 }
  0x1b   : > { %364 = vmatpush1.bf16.msra.mxu0 %v629_v7 }
  0x1c   : > { %365 = vmatprep.subr.bf16.mxu0 %v654_v1 }
  0x1f   : > { %366 = vmatpush1.bf16.msra.mxu0 %v630_v8 }
  0x20   : > { %367 = vmatprep.subr.bf16.mxu0 %v654_v1 }
  0x23   : > { %368 = vmatpush1.bf16.msra.mxu0 %v631_v9 }
  0x24   : > { %369 = vmatprep.subr.bf16.mxu0 %v654_v1 }
  0x27   : > { %370 = vmatpush1.bf16.msra.mxu0 %v632_v10 }
  0x28   : > { %371 = vmatprep.subr.bf16.mxu0 %v654_v1 }
  0x2b   : > { %372 = vmatpush1.bf16.msra.mxu0 %v633_v11 }
  0x2c   : > { %373 = vmatprep.subr.bf16.mxu0 %v654_v1 }
  0x2f   : > { %374 = vmatpush1.bf16.msra.mxu0 %v634_v12 }
  0x30   : > { %375 = vmatprep.subr.bf16.mxu0 %v654_v1 }
  0x33   : > { %376 = vmatpush1.bf16.msra.mxu0 %v635_v13 }
  0x34   : > { %377 = vmatprep.subr.bf16.mxu0 %v654_v1 }
  0x37   : > { %378 = vmatpush1.bf16.msra.mxu0 %v636_v14 }
  0x38   : > { %379 = vmatprep.subr.bf16.mxu0 %v654_v1 }
  0x3b   : > { %380 = vmatpush1.bf16.msra.mxu0 %v637_v15 }
  0x3e   : > { %386 = vmatmul.mubr.bf16.vlgmr.msra.gmra.mrb[0].mxu0 %v638_v16 }
  0x3f   : > { %587 = vmatprep.mubr.msk.bf16.mxu0 %vm346_vm0, %v641_v17 }
  0x46   : > { %394 = vmatmul.mubr.bf16.gmra.mrb[4].mxu0 %v643_v18 }
 0x111   : > { %v387_v22 = vpop.f32.mrb[0].mxu0 }
 0x112   : > { %v388_v23 = vadd.f32 %v567_v21, %v387_v22  ;;  %v389_v24 = vpop.f32.mrb[1].mxu0 }
 0x113   : > { %v390_v25 = vpop.f32.mrb[2].mxu0 }
 0x114   : > { %v391_v26 = vadd.f32 %v567_v21, %v390_v25  ;;  %v392_v27 = vpop.f32.mrb[3].mxu0  ;;  %v402_v28 = vmax.f32 %v388_v23, 0.0 }
 0x116   : > { %v403_v29 = vmax.f32 %v391_v26, 0.0 }
 0x118   : > { %v406_v30 = vpack.c.bf16 %v403_v29, %v402_v28 }
 0x119   : > { %v395_v31 = vpop.f32.mrb[4].mxu0 }
 0x11a   : > { %v396_v32 = vadd.f32 %v567_v21, %v395_v31  ;;  %v397_v33 = vpop.f32.mrb[5].mxu0  ;;  %611 = vmatprep.mubr.msk.bf16.mxu1 %vm424_vm1, %v406_v30 }
 0x11b   : > { %v398_v34 = vpop.f32.mrb[6].mxu0 }
 0x11c   : > { %v399_v35 = vadd.f32 %v567_v21, %v398_v34  ;;  %v400_v36 = vpop.f32.mrb[7].mxu0  ;;  %v404_v37 = vmax.f32 %v396_v32, 0.0 }
 0x11e   : > { %v405_v38 = vmax.f32 %v399_v35, 0.0 }
 0x120   : > { %v407_v39 = vpack.c.bf16 %v405_v38, %v404_v37 }
 0x122   : > { %612 = vmatmul.mubr.msk.bf16.vlgmr.msra.gmra.mrb[0].mxu1 %vm424_vm1, %v407_v39 }
 0x1f5   : > { %v613_v40 = vpop.f32.mrb[0].mxu1 }
 0x1f6   : > { %v601_v41 = vpack.c.bf16 %v613_v40, %v613_v40  ;;  %v465_v42 = vpop.f32.mrb[1].mxu1 }
 0x1f7   : > { %v599_v43 = vpack.c.bf16 %v465_v42, %v465_v42  ;;  %v614_v44 = vpop.f32.mrb[2].mxu1 }
 0x1f8   : > { %499 = vst.msk [vmem:[%s202_s9 + $0x8] sm:$0xf] %vm496_vm2, %v601_v41  ;;  %v602_v45 = vpack.c.bf16 %v614_v44, %v614_v44  ;;  %v468_v46 = vpop.f32.mrb[3].mxu1 }
 0x1f9   : > { %497 = vst.msk [vmem:[%s202_s9] sm:$0xf] %vm496_vm2, %v599_v43  ;;  %v600_v47 = vpack.c.bf16 %v468_v46, %v468_v46 }
 0x1fa   : > { %500 = vst.msk [vmem:[%s202_s9 + $0xc] sm:$0xf] %vm496_vm2, %v602_v45 }
 0x1fb   : > { %498 = vst.msk [vmem:[%s202_s9 + $0x4] sm:$0xf] %vm496_vm2, %v600_v47 }
 0x1fc PF: > { %s14_s15 = sadd.s32 1, %s652_s15  }
 0x1fd   : > { %p11_p4 = scmp.ge.s32.totalorder %s14_s15, 9  }
 0x1ff   :  { %13 = sbr.rel (!%p11_p4) target bundleno = 1 (0x1), region = 66 }

// kernel: gcn_net_forward.3
= control target key start
LH: loop header
LB: loop body
LE: loop exit
PB: predicated region body
PF: predicated region fallthrough
CT: control target
= control target key end

     0   :  { %s738_s18 = smov 0   ;;  %s821_s0 = inlined_call_operand.vmem [shape: bf16[224,224], index: 0, kind: input, shape index: {}]   ;;  %s822_s1 = inlined_call_operand.vmem [shape: bf16[224,16], index: 1, kind: input, shape index: {}]   ;;  %s823_s2 = inlined_call_operand.vmem [shape: f32[1,16], index: 2, kind: input, shape index: {}]   ;;  %s824_s3 = inlined_call_operand.vmem [shape: bf16[16,128], index: 3, kind: input, shape index: {}]   ;;  %s825_s4 = inlined_call_operand.vmem [shape: f32[1,128], index: 4, kind: input, shape index: {}]   ;;  %s826_s5 = inlined_call_operand.vmem [shape: f32[224,128], index: 5, kind: output, shape index: {}]  }
   0x1 LB: > { %s606_s19 = sadd.s32 4294967295, %s705_s18   ;;  %p610_p0 = scmp.ge.s32.totalorder %s705_s18, 1  ;;  %s705_s18 = sphi %s738_s18, %s15_s18  }
   0x2   : > { %p189_p1 = scmp.lt.s32.totalorder %s705_s18, 8 }
   0x4   : > { %p190_p2 = pnand %p610_p0, %p189_p1 }
   0x5   : > { %v662_v0 = vld [vmem:[%s822_s1] sm:$0xff] (!%p190_p2)   ;;  %v707_v1 = vmov (!%p190_p2), 0   ;;  %s611_s22 = sshll.u32 (!%p190_p2), %s606_s19, 2  ;;  %v663_v2 = vld [vmem:[%s822_s1 + $0x8] sm:$0xff] (!%p190_p2)   ;;  %v664_v3 = vld [vmem:[%s822_s1 + $0x10] sm:$0xff] (!%p190_p2)   ;;  %vm373_vm0 = vcmask (!%p190_p2), 785408  }
   0x6   : > { %193 = sbr.rel (%p190_p2) target bundleno = 828 (0x33c), region = 40  ;;  %380 = vmatprep.subr.bf16.mxu0 (!%p190_p2), %v707_v1  ;;  %p219_p3 = scmp.lt.s32.totalorder (!%p190_p2), %s611_s22, 27  ;;  %v665_v4 = vld [vmem:[%s822_s1 + $0x18] sm:$0xff] (!%p190_p2)   ;;  %v666_v5 = vld [vmem:[%s822_s1 + $0x20] sm:$0xff] (!%p190_p2)   ;;  %v667_v7 = vld [vmem:[%s822_s1 + $0x28] sm:$0xff] (!%p190_p2)   ;;  %vm450_vm1 = vcmask (!%p190_p2), 130048  }
   0x7   : > { %381 = vmatpush1.bf16.msra.mxu0 (!%p190_p2), %v662_v0  ;;  %v668_v8 = vld [vmem:[%s822_s1 + $0x30] sm:$0xff] (!%p190_p2)   ;;  %v669_v9 = vld [vmem:[%s822_s1 + $0x38] sm:$0xff] (!%p190_p2)   ;;  %v670_v10 = vld [vmem:[%s822_s1 + $0x40] sm:$0xff] (!%p190_p2)  }
   0x8   : > { %382 = vmatprep.subr.bf16.mxu0 (!%p190_p2), %v707_v1  ;;  %v671_v11 = vld [vmem:[%s822_s1 + $0x48] sm:$0xff] (!%p190_p2)   ;;  %v672_v12 = vld [vmem:[%s822_s1 + $0x50] sm:$0xff] (!%p190_p2)   ;;  %v673_v13 = vld [vmem:[%s822_s1 + $0x58] sm:$0xff] (!%p190_p2)  }
   0x9   : > { %v674_v14 = vld [vmem:[%s822_s1 + $0x60] sm:$0xff] (!%p190_p2)   ;;  %v675_v15 = vld [vmem:[%s822_s1 + $0x68] sm:$0xff] (!%p190_p2)  }
   0xa   : > { %v682_v19 = vld [vmem:[%s824_s3] sm:$0xff] (!%p190_p2)  }
   0xb   : > { %383 = vmatpush1.bf16.msra.mxu0 (!%p190_p2), %v663_v2  ;;  %647 = vmatprep.subr.bf16.mxu1 (!%p190_p2), %v682_v19  ;;  %v616_v20 = vld [vmem:[%s823_s2] ss:$0 sm:$0xff] (!%p190_p2) }
   0xc   : > { %384 = vmatprep.subr.bf16.mxu0 (!%p190_p2), %v707_v1  ;;  %648 = vmatpush3.bf16.msra.mxu1 (!%p190_p2), %v682_v19  ;;  %v637_v39 = vld [vmem:[%s825_s4] ss:$0 sm:$0xff] (!%p190_p2) }
   0xd   : > { %s828_s22 = smov (!%p219_p3, %s611_s22), 27 }
   0xe   : > { %s643_s27 = sshll.u32 %s828_s22, 3 }
   0xf   : > { %385 = vmatpush1.bf16.msra.mxu0 %v664_v3  ;;  %s766_s7 = scalar_lea.vmem %s821_s0, %s643_s27  ;;  %s229_s14 = scalar_lea.vmem %s826_s5, %s643_s27 }
  0x10   : > { %386 = vmatprep.subr.bf16.mxu0 %v707_v1  ;;  %v678_v6 = vld [vmem:[%s766_s7 + $0x4] ss:$8 sps:$4 sm:$0xff]   ;;  %v676_v16 = vld [vmem:[%s766_s7] ss:$8 sps:$4 sm:$0xff]   ;;  %v679_v17 = vld [vmem:[%s766_s7 + $0x14] ss:$8 sps:$4 sm:$0xff]  }
  0x11   : > { %635 = vmatprep.mubr.msk.bf16.mxu0 %vm373_vm0, %v678_v6  ;;  %v681_v18 = vld [vmem:[%s766_s7 + $0x10] ss:$8 sps:$4 sm:$0xff]  }
  0x13   : > { %387 = vmatpush1.bf16.msra.mxu0 %v665_v4 }
  0x14   : > { %388 = vmatprep.subr.bf16.mxu0 %v707_v1 }
  0x17   : > { %389 = vmatpush1.bf16.msra.mxu0 %v666_v5 }
  0x18   : > { %390 = vmatprep.subr.bf16.mxu0 %v707_v1 }
  0x1b   : > { %391 = vmatpush1.bf16.msra.mxu0 %v667_v7 }
  0x1c   : > { %392 = vmatprep.subr.bf16.mxu0 %v707_v1 }
  0x1f   : > { %393 = vmatpush1.bf16.msra.mxu0 %v668_v8 }
  0x20   : > { %394 = vmatprep.subr.bf16.mxu0 %v707_v1 }
  0x23   : > { %395 = vmatpush1.bf16.msra.mxu0 %v669_v9 }
  0x24   : > { %396 = vmatprep.subr.bf16.mxu0 %v707_v1 }
  0x27   : > { %397 = vmatpush1.bf16.msra.mxu0 %v670_v10 }
  0x28   : > { %398 = vmatprep.subr.bf16.mxu0 %v707_v1 }
  0x2b   : > { %399 = vmatpush1.bf16.msra.mxu0 %v671_v11 }
  0x2c   : > { %400 = vmatprep.subr.bf16.mxu0 %v707_v1 }
  0x2f   : > { %401 = vmatpush1.bf16.msra.mxu0 %v672_v12 }
  0x30   : > { %402 = vmatprep.subr.bf16.mxu0 %v707_v1 }
  0x33   : > { %403 = vmatpush1.bf16.msra.mxu0 %v673_v13 }
  0x34   : > { %404 = vmatprep.subr.bf16.mxu0 %v707_v1 }
  0x37   : > { %405 = vmatpush1.bf16.msra.mxu0 %v674_v14 }
  0x38   : > { %406 = vmatprep.subr.bf16.mxu0 %v707_v1 }
  0x3b   : > { %407 = vmatpush1.bf16.msra.mxu0 %v675_v15 }
  0x3e   : > { %413 = vmatmul.mubr.bf16.vlgmr.msra.gmra.mrb[0].mxu0 %v676_v16 }
  0x3f   : > { %636 = vmatprep.mubr.msk.bf16.mxu0 %vm373_vm0, %v679_v17 }
  0x46   : > { %421 = vmatmul.mubr.bf16.gmra.mrb[4].mxu0 %v681_v18 }
 0x111   : > { %v414_v21 = vpop.f32.mrb[0].mxu0 }
 0x112   : > { %v415_v22 = vadd.f32 %v616_v20, %v414_v21  ;;  %v416_v23 = vpop.f32.mrb[1].mxu0 }
 0x113   : > { %v417_v24 = vpop.f32.mrb[2].mxu0 }
 0x114   : > { %v418_v25 = vadd.f32 %v616_v20, %v417_v24  ;;  %v419_v26 = vpop.f32.mrb[3].mxu0  ;;  %v429_v27 = vmax.f32 %v415_v22, 0.0 }
 0x116   : > { %v430_v28 = vmax.f32 %v418_v25, 0.0 }
 0x118   : > { %v433_v29 = vpack.c.bf16 %v430_v28, %v429_v27 }
 0x119   : > { %v422_v30 = vpop.f32.mrb[4].mxu0 }
 0x11a   : > { %v423_v31 = vadd.f32 %v616_v20, %v422_v30  ;;  %v424_v32 = vpop.f32.mrb[5].mxu0  ;;  %649 = vmatprep.mubr.msk.bf16.mxu1 %vm450_vm1, %v433_v29 }
 0x11b   : > { %v425_v33 = vpop.f32.mrb[6].mxu0 }
 0x11c   : > { %v426_v34 = vadd.f32 %v616_v20, %v425_v33  ;;  %v427_v35 = vpop.f32.mrb[7].mxu0  ;;  %v431_v36 = vmax.f32 %v423_v31, 0.0 }
 0x11e   : > { %v432_v37 = vmax.f32 %v426_v34, 0.0 }
 0x120   : > { %v434_v38 = vpack.c.bf16 %v432_v37, %v431_v36 }
 0x122   : > { %650 = vmatmul.mubr.msk.bf16.vlgmr.msra.gmra.mrb[0].mxu1 %vm450_vm1, %v434_v38 }
 0x1f5   : > { %v651_v40 = vpop.f32.mrb[0].mxu1 }
 0x1f6   : > { %v500_v41 = vadd.f32 %v651_v40, %v637_v39  ;;  %v491_v42 = vpop.f32.mrb[1].mxu1 }
 0x1f7   : > { %v492_v43 = vadd.f32 %v637_v39, %v491_v42  ;;  %v652_v44 = vpop.f32.mrb[2].mxu1 }
 0x1f8   : > { %510 = vmax.xlane.f32.xlu1 %v500_v41  ;;  %v494_v45 = vpop.f32.mrb[3].mxu1  ;;  %v503_v46 = vadd.f32 %v652_v44, %v637_v39 }
 0x1f9   : > { %506 = vmax.xlane.f32.xlu0 %v492_v43  ;;  %v495_v47 = vadd.f32 %v637_v39, %v494_v45 }
 0x1fc   : > { %512 = vmax.xlane.f32.xlu1 %v503_v46 }
 0x1fd   : > { %508 = vmax.xlane.f32.xlu0 %v495_v47 }
 0x285   : > { %v511_v48 = vpop.xlane.xlu1 %510 }
 0x286   : > { %v516_v49 = vsub.f32 %v500_v41, %v511_v48  ;;  %v507_v50 = vpop.xlane.xlu0 %506 }
 0x287   : > { %v514_v51 = vsub.f32 %v492_v43, %v507_v50 }
 0x288   : > { %v522_v54 = vmul.f32 1.442695, %v516_v49 }
 0x289   : > { %v518_v52 = vmul.f32 1.442695, %v514_v51  ;;  %v513_v53 = vpop.xlane.xlu1 %512 }
 0x28a   : > { %v509_v55 = vpop.xlane.xlu0 %508  ;;  %v517_v56 = vsub.f32 %v503_v46, %v513_v53 }
 0x28b   : > { %683 = vpow2.f32 %v518_v52  ;;  %v515_v57 = vsub.f32 %v495_v47, %v509_v55 }
 0x28c   : > { %685 = vpow2.f32 %v522_v54  ;;  %v524_v59 = vmul.f32 1.442695, %v517_v56 }
 0x28d   : > { %v520_v58 = vmul.f32 1.442695, %v515_v57 }
 0x28f   : > { %687 = vpow2.f32 %v520_v58 }
 0x290   : > { %689 = vpow2.f32 %v524_v59 }
 0x295   : > { %v684_v60 = vpop.eup %683 }
 0x296   : > { %526 = vadd.xlane.f32.xlu0 %v684_v60  ;;  %v686_v61 = vpop.eup %685 }
 0x299   : > { %v688_v62 = vpop.eup %687 }
 0x29a   : > { %530 = vadd.xlane.f32.xlu0 %v686_v61  ;;  %528 = vadd.xlane.f32.xlu1 %v688_v62  ;;  %v690_v63 = vpop.eup %689 }
 0x29e   : > { %532 = vadd.xlane.f32.xlu1 %v690_v63 }
 0x323   : > { %v527_v0 = vpop.xlane.xlu0 %526 }
 0x324   : > { %691 = vlog2.f32 %v527_v0 }
 0x327   : > { %v529_v1 = vpop.xlane.xlu1 %528  ;;  %v531_v2 = vpop.xlane.xlu0 %530 }
 0x328   : > { %693 = vlog2.f32 %v529_v1 }
 0x329   : > { %695 = vlog2.f32 %v531_v2 }
 0x32b   : > { %v533_v3 = vpop.xlane.xlu1 %532 }
 0x32c   : > { %697 = vlog2.f32 %v533_v3 }
 0x32e   : > { %v692_v4 = vpop.eup %691 }
 0x32f   : > { %v535_v5 = vmul.f32 0.6931472, %v692_v4 }
 0x331   : > { %v542_v6 = vsub.f32 %v514_v51, %v535_v5 }
 0x332   : > { %v694_v7 = vpop.eup %693 }
 0x333   : > { %v696_v8 = vpop.eup %695  ;;  %546 = vst [vmem:[%s229_s14] sm:$0xff] %v542_v6  ;;  %v537_v9 = vmul.f32 0.6931472, %v694_v7 }
 0x334   : > { %v539_v10 = vmul.f32 0.6931472, %v696_v8 }
 0x335   : > { %v543_v11 = vsub.f32 %v515_v57, %v537_v9 }
 0x336   : > { %v698_v12 = vpop.eup %697  ;;  %v544_v13 = vsub.f32 %v516_v49, %v539_v10 }
 0x337   : > { %547 = vst [vmem:[%s229_s14 + $0x8] sm:$0xff] %v543_v11  ;;  %v541_v14 = vmul.f32 0.6931472, %v698_v12 }
 0x338   : > { %548 = vst [vmem:[%s229_s14 + $0x10] sm:$0xff] %v544_v13 }
 0x339   : > { %v545_v15 = vsub.f32 %v517_v56, %v541_v14 }
 0x33b   : > { %549 = vst [vmem:[%s229_s14 + $0x18] sm:$0xff] %v545_v15 }
 0x33c PF: > { %s15_s18 = sadd.s32 1, %s705_s18  }
 0x33d   : > { %p12_p4 = scmp.ge.s32.totalorder %s15_s18, 9  }
 0x33f   :  { %14 = sbr.rel (!%p12_p4) target bundleno = 1 (0x1), region = 70 }

</bundles_post_ra>
